<compile_context>
chip_gen: v6e
topology: v6e:2x2x1
jax: 0.10.0
libtpu: 0.0.40
codegen_flags: <defaults>
</compile_context>

<pallas_src>
import functools

import jax
import jax.numpy as jnp
from jax.experimental import pallas as pl
from jax.experimental.pallas import tpu as pltpu


def _tile_lse_and_target(logits_ref, tgt_ref):
    """Stable log-sum-exp over channels and the target's shifted logit."""
    x = logits_ref[0].astype(jnp.float32)          # (C, TILE) channels on sublanes
    tgt = tgt_ref[0].astype(jnp.int32)             # (1, TILE) upcast in vregs
    c, tile = x.shape

    m = jnp.max(x, axis=0, keepdims=True)          # (1, TILE)
    z = x - m
    lse = jnp.log(jnp.sum(jnp.exp(z), axis=0, keepdims=True))   # (1, TILE)

    ch = jax.lax.broadcasted_iota(jnp.int32, (c, tile), 0)
    hit = ch == tgt                                # (C, TILE) one-hot of target
    z_t = jnp.sum(jnp.where(hit, z, 0.0), axis=0, keepdims=True)  # z[target]
    return lse, z_t, hit


def _valid_lanes(p, t, tile_hw, n_tp, hw):
    lane = jax.lax.broadcasted_iota(jnp.int32, (1, tile_hw), 1)
    return ((p * n_tp + t) * tile_hw + lane) < hw


def _ce2d_weighted_kernel(logits_ref, tgt_ref, w_ref, out_ref, loss_acc, w_acc,
                          *, hw, tile_hw, n_tp, masked):
    p = pl.program_id(1)
    t = pl.program_id(2)

    @pl.when(t == 0)
    def _():
        loss_acc[...] = jnp.zeros_like(loss_acc)
        w_acc[...] = jnp.zeros_like(w_acc)

    lse, z_t, hit = _tile_lse_and_target(logits_ref, tgt_ref)
    w = w_ref[...].astype(jnp.float32)             # (C, 1) resident class weights
    w_t = jnp.sum(jnp.where(hit, w, 0.0), axis=0, keepdims=True)  # weight[target]

    # -w[t] * logp[t] = w[t] * (lse - z[t])
    contrib = w_t * (lse - z_t)

    if masked:
        # Padded lanes / clamped duplicate tiles: mask only the reduced
        # (1, TILE) vectors; a true select never leaks NaN/inf from dead lanes.
        valid = _valid_lanes(p, t, tile_hw, n_tp, hw)
        contrib = jnp.where(valid, contrib, 0.0)
        w_t = jnp.where(valid, w_t, 0.0)

    loss_acc[...] += contrib
    w_acc[...] += w_t

    @pl.when(t == pl.num_programs(2) - 1)
    def _():
        out_ref[0, 0, 0] = jnp.sum(loss_acc[...])  # per-(n,p) weighted NLL sum
        out_ref[0, 0, 1] = jnp.sum(w_acc[...])     # per-(n,p) weight sum


def _ce2d_unweighted_kernel(logits_ref, tgt_ref, out_ref, loss_acc,
                            *, hw, tile_hw, n_tp, masked):
    p = pl.program_id(1)
    t = pl.program_id(2)

    @pl.when(t == 0)
    def _():
        loss_acc[...] = jnp.zeros_like(loss_acc)

    lse, z_t, _ = _tile_lse_and_target(logits_ref, tgt_ref)
    contrib = lse - z_t                            # -logp[target]

    if masked:
        valid = _valid_lanes(p, t, tile_hw, n_tp, hw)
        contrib = jnp.where(valid, contrib, 0.0)

    loss_acc[...] += contrib

    @pl.when(t == pl.num_programs(2) - 1)
    def _():
        out_ref[0, 0, 0] = jnp.sum(loss_acc[...])  # per-(n,p) NLL sum


def _pick_tile_hw(hw, c, itemsize):
    # Target ~6 MiB of logits per HBM block (double-buffered ~12 MiB) while
    # capping the f32 (C, tile) elementwise temporaries Mosaic materializes at
    # ~6 MiB each.  Together with the 48 MiB scoped-VMEM limit this double
    # buffers cleanly even on v7x (64 MiB / TensorCore) and is large enough to
    # amortize the ~0.35us per-grid-step overhead on v5e/v6e.
    c = max(c, 1)
    budget_px = min((6 * 1024 * 1024) // (itemsize * c),
                    (6 * 1024 * 1024) // (4 * c))
    cap = max(512, (budget_px // 128) * 128)
    return hw if hw <= cap else cap


@functools.partial(jax.jit, static_argnames=("tile_hw", "pixel_chunks"))
def cross_entropy_loss_2d(outputs, targets, class_weights=None,
                          tile_hw=None, pixel_chunks=None):
    """outputs: (N, C, H, W) float (read in its native dtype),
    targets: (N, H, W) int, class_weights: (C,) float or None (module default)."""
    N, C, H, W = outputs.shape
    HW = H * W

    # Free reshape only -- no transpose / pad / upcast passes over HBM.
    logits = outputs.reshape(N, C, HW)

    # Carry targets at the narrowest width that can hold C-1 (int8 for C<=127);
    # the kernel upcasts in vregs.  No-op if the caller already supplies a
    # narrow dtype; otherwise the convert ideally fuses with targets' producer.
    if C <= 127:
        tgt_dtype = jnp.int8
    elif C <= 2 ** 15 - 1:
        tgt_dtype = jnp.int16
    else:
        tgt_dtype = jnp.int32
    tgt = targets.reshape(N, 1, HW)
    if tgt.dtype != tgt_dtype:
        tgt = tgt.astype(tgt_dtype)

    itemsize = jnp.dtype(outputs.dtype).itemsize
    if tile_hw is None:
        tile_hw = _pick_tile_hw(HW, C, itemsize)
    tile_hw = min(int(tile_hw), HW)
    if tile_hw < HW:
        tile_hw = max(128, (tile_hw // 128) * 128)   # lane-aligned partial tiles
    n_t = pl.cdiv(HW, tile_hw)

    # Second "parallel" grid axis (pixel super-chunks) so both TensorCores on
    # v7x get work even when N == 1; on single-TC v5e/v6e it is just a loop
    # split (no harm).
    if pixel_chunks is None:
        n_p = 2 if n_t >= 2 else 1
    else:
        n_p = max(1, min(int(pixel_chunks), n_t))
    n_tp = pl.cdiv(n_t, n_p)
    padded_tiles = n_p * n_tp > n_t                  # clamped duplicate tiles
    masked = (n_p * n_tp * tile_hw) != HW            # any padded lanes at all

    def px_block(p, t):
        idx = p * n_tp + t
        if padded_tiles:
            idx = jnp.minimum(idx, n_t - 1)          # duplicates are fully masked
        return idx

    logits_spec = pl.BlockSpec((1, C, tile_hw), lambda n, p, t: (n, 0, px_block(p, t)))
    tgt_spec = pl.BlockSpec((1, 1, tile_hw), lambda n, p, t: (n, 0, px_block(p, t)))

    compiler_params = pltpu.CompilerParams(
        dimension_semantics=("parallel", "parallel", "arbitrary"),
        vmem_limit_bytes=48 * 1024 * 1024,
    )

    if class_weights is None:
        # Unweighted fast path: no weight input, no weight accumulator.
        kernel = functools.partial(_ce2d_unweighted_kernel, hw=HW,
                                   tile_hw=tile_hw, n_tp=n_tp, masked=masked)
        parts = pl.pallas_call(
            kernel,
            out_shape=jax.ShapeDtypeStruct((N, n_p, 1), jnp.float32),
            grid_spec=pltpu.PrefetchScalarGridSpec(
                num_scalar_prefetch=0,
                grid=(N, n_p, n_tp),
                in_specs=[logits_spec, tgt_spec],
                out_specs=pl.BlockSpec((1, 1, 1), lambda n, p, t: (n, p, 0),
                                       memory_space=pltpu.SMEM),
                scratch_shapes=[pltpu.VMEM((1, tile_hw), jnp.float32)],
            ),
            compiler_params=compiler_params,
        )(logits, tgt)
        # Every pixel has weight 1 -> mean over all N*HW pixels.
        return jnp.sum(parts) / (N * HW)

    w = class_weights.reshape(C, 1).astype(jnp.float32)
    kernel = functools.partial(_ce2d_weighted_kernel, hw=HW,
                               tile_hw=tile_hw, n_tp=n_tp, masked=masked)
    parts = pl.pallas_call(
        kernel,
        out_shape=jax.ShapeDtypeStruct((N, n_p, 2), jnp.float32),
        grid_spec=pltpu.PrefetchScalarGridSpec(
            num_scalar_prefetch=0,
            grid=(N, n_p, n_tp),
            in_specs=[logits_spec, tgt_spec,
                      pl.BlockSpec((C, 1), lambda n, p, t: (0, 0))],
            out_specs=pl.BlockSpec((1, 1, 2), lambda n, p, t: (n, p, 0),
                                   memory_space=pltpu.SMEM),
            scratch_shapes=[pltpu.VMEM((1, tile_hw), jnp.float32),
                            pltpu.VMEM((1, tile_hw), jnp.float32)],
        ),
        compiler_params=compiler_params,
    )(logits, tgt, w)

    # Weighted mean = sum(w[t] * nll) / sum(w[t]).
    # TODO(synk): like PyTorch, this returns NaN if the total target weight is zero.
    return jnp.sum(parts[..., 0]) / jnp.sum(parts[..., 1])


def _reference(outputs, targets, class_weights=None):
    # Plain-JAX reference: log_softmax(dim=1) + NLLLoss2d ((un)weighted mean).
    logp = jax.nn.log_softmax(outputs.astype(jnp.float32), axis=1)   # (N,C,H,W)
    logp = jnp.transpose(logp, (0, 2, 3, 1))                         # (N,H,W,C)
    idx = targets.astype(jnp.int32)
    picked = jnp.take_along_axis(logp, idx[..., None], axis=-1)[..., 0]
    if class_weights is None:
        return jnp.mean(-picked)
    w_t = class_weights[idx]
    return jnp.sum(w_t * (-picked)) / jnp.sum(w_t)


if __name__ == "__main__":
    key = jax.random.PRNGKey(0)
    k1, k2, k3, k4, k5, k6, k7 = jax.random.split(key, 7)

    # Case 1: module as constructed (weights=None -> unweighted fast path),
    # f32 logits, single pixel tile.
    N, C, H, W = 2, 4, 16, 16
    outputs = jax.random.normal(k1, (N, C, H, W), dtype=jnp.float32)
    targets = jax.random.randint(k2, (N, H, W), 0, C, dtype=jnp.int32)
    loss = jax.block_until_ready(cross_entropy_loss_2d(outputs, targets))
    ref = _reference(outputs, targets)
    assert jnp.allclose(loss, ref, atol=1e-5, rtol=1e-5), (loss, ref)

    # Case 2: non-uniform class weights + ragged spatial extent + forced small
    # tile -> weighted path, multi-tile pixel grid with clamped duplicate
    # tiles, in-kernel lane masking, int8 target downcast.
    N2, C2, H2, W2 = 2, 4, 17, 17
    outputs2 = jax.random.normal(k3, (N2, C2, H2, W2), dtype=jnp.float32)
    targets2 = jax.random.randint(k4, (N2, H2, W2), 0, C2, dtype=jnp.int32)
    weights2 = jax.random.uniform(k5, (C2,), jnp.float32, 0.5, 1.5)
    loss2 = jax.block_until_ready(
        cross_entropy_loss_2d(outputs2, targets2, weights2, tile_hw=128))
    ref2 = _reference(outputs2, targets2, weights2)
    assert jnp.allclose(loss2, ref2, atol=1e-5, rtol=1e-5), (loss2, ref2)

    # Case 3: bf16 logits read in native precision, batch of 1 (pixel
    # super-chunk axis keeps both v7x TensorCores busy), int8 targets supplied
    # directly, ragged unweighted path.
    N3, C3, H3, W3 = 1, 4, 33, 33
    outputs3 = jax.random.normal(k6, (N3, C3, H3, W3), dtype=jnp.bfloat16)
    targets3 = jax.random.randint(k7, (N3, H3, W3), 0, C3,
                                  dtype=jnp.int32).astype(jnp.int8)
    loss3 = jax.block_until_ready(
        cross_entropy_loss_2d(outputs3, targets3, tile_hw=128))
    ref3 = _reference(outputs3, targets3)
    assert jnp.allclose(loss3, ref3, atol=1e-4, rtol=1e-4), (loss3, ref3)

    print("KERNEL_OK")
</pallas_src>

<mosaic_0001>
module attributes {stable_mosaic.version = 11 : i64} {
  func.func @_ce2d_unweighted_kernel(%arg0: i32, %arg1: i32, %arg2: i32, %arg3: memref<1x4x256xf32, #tpu.memory_space<vmem>>, %arg4: memref<1x1x256xi8, #tpu.memory_space<vmem>>, %arg5: memref<1x1x1xf32, #tpu.memory_space<smem>>, %arg6: memref<1x256xf32, #tpu.memory_space<vmem>>) attributes {dimension_semantics = [#tpu.dimension_semantics<parallel>, #tpu.dimension_semantics<parallel>, #tpu.dimension_semantics<arbitrary>], iteration_bounds = array<i64: 2, 1, 1>, scalar_prefetch = 0 : i64, scratch_operands = 1 : i64, tpu.core_type = #tpu.core_type<tc>, window_params = [{transform_indices = @transform_0, window_bounds = array<i64: 1, 4, 256>}, {transform_indices = @transform_1, window_bounds = array<i64: 1, 1, 256>}, {transform_indices = @transform_2, window_bounds = array<i64: 1, 1, 1>}]} {
    %c0_i32 = arith.constant 0 : i32
    %0 = arith.cmpi eq, %arg2, %c0_i32 : i32
    %1 = arith.extui %0 : i1 to i32
    %c0_i32_0 = arith.constant 0 : i32
    %2 = arith.cmpi ne, %1, %c0_i32_0 : i32
    scf.if %2 {
      %cst_15 = arith.constant 0.000000e+00 : f32
      %30 = vector.broadcast %cst_15 : f32 to vector<1x256xf32>
      %c0_16 = arith.constant 0 : index
      %c0_17 = arith.constant 0 : index
      %31 = vector.load %arg6[%c0_16, %c0_17] : memref<1x256xf32, #tpu.memory_space<vmem>>, vector<1x256xf32>
      tpu.vector_store %arg6[%c0_16, %c0_17], %30 {strides = array<i32>} : memref<1x256xf32, #tpu.memory_space<vmem>>, vector<1x256xf32>,
    } else {
    }
    %c0 = arith.constant 0 : index
    %c0_1 = arith.constant 0 : index
    %c0_2 = arith.constant 0 : index
    %3 = vector.load %arg3[%c0, %c0_1, %c0_2] : memref<1x4x256xf32, #tpu.memory_space<vmem>>, vector<1x4x256xf32>
    %4 = vector.shape_cast %3 : vector<1x4x256xf32> to vector<4x256xf32>
    %c0_3 = arith.constant 0 : index
    %c0_4 = arith.constant 0 : index
    %c0_5 = arith.constant 0 : index
    %5 = vector.load %arg4[%c0_3, %c0_4, %c0_5] : memref<1x1x256xi8, #tpu.memory_space<vmem>>, vector<1x1x256xi8>
    %6 = vector.shape_cast %5 : vector<1x1x256xi8> to vector<1x256xi8>
    %7 = arith.extsi %6 : vector<1x256xi8> to vector<1x256xi32>
    %cst = arith.constant dense<0xFF800000> : vector<256xf32>
    %8 = vector.multi_reduction <maximumf>, %4, %cst [0] : vector<4x256xf32> to vector<256xf32>
    %9 = vector.shape_cast %8 : vector<256xf32> to vector<1x256xf32>
    %10 = vector.broadcast %9 : vector<1x256xf32> to vector<4x256xf32>
    %11 = arith.subf %4, %10 : vector<4x256xf32>
    %12 = math.exp %11 : vector<4x256xf32>
    %cst_6 = arith.constant dense<0.000000e+00> : vector<256xf32>
    %13 = vector.multi_reduction <add>, %12, %cst_6 [0] : vector<4x256xf32> to vector<256xf32>
    %14 = vector.shape_cast %13 : vector<256xf32> to vector<1x256xf32>
    %15 = math.log %14 : vector<1x256xf32>
    %16 = tpu.iota {dimensions = array<i32: 0>} : vector<4x256xi32>
    %17 = vector.broadcast %7 : vector<1x256xi32> to vector<4x256xi32>
    %18 = arith.cmpi eq, %16, %17 : vector<4x256xi32>
    %cst_7 = arith.constant 0.000000e+00 : f32
    %19 = vector.broadcast %cst_7 : f32 to vector<4x256xf32>
    %20 = arith.select %18, %11, %19 : vector<4x256xi1>, vector<4x256xf32>
    %cst_8 = arith.constant dense<0.000000e+00> : vector<256xf32>
    %21 = vector.multi_reduction <add>, %20, %cst_8 [0] : vector<4x256xf32> to vector<256xf32>
    %22 = vector.shape_cast %21 : vector<256xf32> to vector<1x256xf32>
    %23 = arith.subf %15, %22 : vector<1x256xf32>
    %c0_9 = arith.constant 0 : index
    %c0_10 = arith.constant 0 : index
    %24 = vector.load %arg6[%c0_9, %c0_10] : memref<1x256xf32, #tpu.memory_space<vmem>>, vector<1x256xf32>
    %25 = arith.addf %24, %23 : vector<1x256xf32>
    %c0_11 = arith.constant 0 : index
    %c0_12 = arith.constant 0 : index
    %26 = vector.load %arg6[%c0_11, %c0_12] : memref<1x256xf32, #tpu.memory_space<vmem>>, vector<1x256xf32>
    tpu.vector_store %arg6[%c0_11, %c0_12], %25 {strides = array<i32>} : memref<1x256xf32, #tpu.memory_space<vmem>>, vector<1x256xf32>,
    %c0_i32_13 = arith.constant 0 : i32
    %27 = arith.cmpi eq, %arg2, %c0_i32_13 : i32
    %28 = arith.extui %27 : i1 to i32
    %c0_i32_14 = arith.constant 0 : i32
    %29 = arith.cmpi ne, %28, %c0_i32_14 : i32
    scf.if %29 {
      %c0_15 = arith.constant 0 : index
      %c0_16 = arith.constant 0 : index
      %30 = vector.load %arg6[%c0_15, %c0_16] : memref<1x256xf32, #tpu.memory_space<vmem>>, vector<1x256xf32>
      %31 = vector.shape_cast %30 : vector<1x256xf32> to vector<1x1x256xf32>
      %cst_17 = arith.constant dense<0.000000e+00> : vector<1xf32>
      %32 = vector.multi_reduction <add>, %31, %cst_17 [1, 2] : vector<1x1x256xf32> to vector<1xf32>
      %33 = vector.shape_cast %32 : vector<1xf32> to vector<1x1x1xf32>
      %34 = vector.extract %33[0, 0, 0] : f32 from vector<1x1x1xf32>
      %c0_18 = arith.constant 0 : index
      %c0_19 = arith.constant 0 : index
      %c0_20 = arith.constant 0 : index
      %35 = memref.load %arg5[%c0_18, %c0_19, %c0_20] : memref<1x1x1xf32, #tpu.memory_space<smem>>
      memref.store %34, %arg5[%c0_18, %c0_19, %c0_20] : memref<1x1x1xf32, #tpu.memory_space<smem>>
    } else {
    }
    return
  }
  func.func @transform_0(%arg0: i32, %arg1: i32, %arg2: i32) -> (i32, i32, i32) {
    %c1_i32 = arith.constant 1 : i32
    %0 = arith.muli %arg1, %c1_i32 : i32
    %1 = arith.addi %0, %arg2 : i32
    %c0_i32 = arith.constant 0 : i32
    %c0_i32_0 = arith.constant 0 : i32
    return %arg0, %c0_i32, %1 : i32, i32, i32
  }
  func.func @transform_1(%arg0: i32, %arg1: i32, %arg2: i32) -> (i32, i32, i32) {
    %c1_i32 = arith.constant 1 : i32
    %0 = arith.muli %arg1, %c1_i32 : i32
    %1 = arith.addi %0, %arg2 : i32
    %c0_i32 = arith.constant 0 : i32
    %c0_i32_0 = arith.constant 0 : i32
    return %arg0, %c0_i32, %1 : i32, i32, i32
  }
  func.func @transform_2(%arg0: i32, %arg1: i32, %arg2: i32) -> (i32, i32, i32) {
    %c0_i32 = arith.constant 0 : i32
    %c0_i32_0 = arith.constant 0 : i32
    return %arg0, %arg1, %c0_i32 : i32, i32, i32
  }
}

</mosaic_0001>

<bundles_post_ra>
// kernel: cross_entropy_loss_2d.1
= control target key start
LH: loop header
LB: loop body
LE: loop exit
PB: predicated region body
PF: predicated region fallthrough
CT: control target
= control target key end

     0   :  { %7 = vsyncpa [#allocation4], 0  ;;  %s770_s0 = inlined_call_operand.vmem [shape: f32[2,4,256], index: 0, kind: input, shape index: {}]   ;;  %s771_s1 = inlined_call_operand.vmem [shape: s8[2,1,256], index: 1, kind: input, shape index: {}]   ;;  %s772_s2 = inlined_call_operand.vmem [shape: f32[2,1,1], index: 2, kind: output, shape index: {}]  }
   0x1   :  { %9 = vsyncpa [#allocation4 + $0x1], 0  ;;  %s643_s9 = smov 0   ;;  %s645_s10 = smov 0  }
   0x2   :  { %s647_s11 = smov 0   ;;  %s649_s12 = smov 0  }
   0x3   :  { %s651_s13 = smov 0   ;;  %s653_s14 = smov 0  }
   0x4 LB: > { %s486_s15 = sadd.s32 4294967295, %s624_s14   ;;  %s487_s16 = sadd.s32 4294967294, %s624_s14   ;;  %s624_s14 = sphi %s653_s14, %s15_s14   ;;  %s620_s13 = sphi %s651_s13, %s781_s13   ;;  %s616_s12 = sphi %s649_s12, %s780_s12   ;;  %s612_s11 = sphi %s647_s11, %s779_s11   ;;  %s608_s10 = sphi %s645_s10, %s778_s10   ;;  %s604_s9 = sphi %s643_s9, %s777_s9  }
   0x5   : > { %s34_s17 = sadd.s32 1, %s620_s13  ;;  %s103_s18 = sadd.s32 1, %s612_s11 }
   0x6   : > { %p36_p0 = scmp.ge.s32.totalorder %s34_s17, 2  ;;  %p113_p1 = scmp.ne.s32.totalorder %s612_s11, %s608_s10 }
   0x7   : > { %p114_p2 = scmp.eq.s32.totalorder %s486_s15, 1  ;;  %p119_p3 = scmp.ne.s32.totalorder %s608_s10, %s604_s9 }
   0x8   : > { %s783_s17 = smov (%p36_p0, %s34_s17), 0  ;;  %p120_p5 = scmp.eq.s32.totalorder %s487_s16, 1 }
   0x9   : > { %p683_p4 = por %p114_p2, %p113_p1  ;;  %s98_s20 = ssub.s32 %s620_s13, %s783_s17 }
   0xa   : > { %p490_p6 = scmp.ge.s32.totalorder %s624_s14, 1  ;;  %p101_p7 = scmp.eq.s32.totalorder %s98_s20, 0 }
   0xb   : > { %p690_p8 = por %p120_p5, %p119_p3  ;;  %p167_p9 = scmp.lt.s32.totalorder %s624_s14, 3 }
   0xc   : > { %s696_s22 = scalar_select %p101_p7, %s612_s11, %s103_s18  }
   0xd   : > { %p168_p10 = pnand %p490_p6, %p167_p9 }
   0xe   : > { %p205_p11 = scmp.lt.s32.totalorder (!%p168_p10), %s616_s12, 1  ;;  %s200_s4 = sand.u32 (!%p168_p10), 1, %s608_s10  }
   0xf   : > { %171 = sbr.rel (%p168_p10) target bundleno = 317 (0x13d), region = 28  ;;  %s392_s7 = scalar_lea.vmem (!%p168_p10), %s772_s2, %s616_s12 }
  0x10   : > { %s491_s8 = sshll.u32 (!%p168_p10), %s200_s4, 7  ;;  %s394_s15 = sshll.u32 (!%p168_p10), %s392_s7, 4  ;;  %s395_s15 = int_to_ptr.vmem [resolvable:$true] %s394_s15 }
  0x11   : > { %s202_s18 = scalar_lea.smem (!%p168_p10), [#allocation3], %s491_s8  ;;  %s381_s20 = scalar_lea.sflag (!%p168_p10), [#allocation4], %s200_s4 }
  0x12   : > { %s564_s26 = sshll.u32 (!%p168_p10), %s772_s2, 4  ;;  %s565_s26 = int_to_ptr.vmem [resolvable:$false] %s564_s26 }
  0x13   : > { %p567_p1 = scmp.lt.s32.totalorder (!%p168_p10), %s395_s15, %s565_s26 }
  0x14   : > { %v230_v0 = vlaneseq  ;;  %s206_s23 = scalar_select %p205_p11, %s616_s12, 1  ;;  %v626_v2 = vmov 0.0   ;;  %vm241_vm1 = vcmask 1043456   ;;  %v627_v62 = vmov 1966171168  }
  0x15   : > { %v330_v63 = vunpack.c.l.s4 %v627_v62  ;;  %vm365_vm4 = vcmask 1040384  }
  0x16   : > { %vm700_vm0 = vcmp.lt.s32.totalorder %v230_v0, 256  ;;  %s498_s24 = sshll.u32 %s206_s23, 3  ;;  %s494_s28 = sshll.u32 %s206_s23, 1  ;;  %v714_v20 = vshrl.u32 %v230_v0, 7 }
  0x17   : > { %234 = vst.msk [vmem:[#allocation2] sm:$0x3] %vm700_vm0, %v626_v2  ;;  %s212_s27 = scalar_lea.vmem %s770_s0, %s498_s24  ;;  %s223_s3 = scalar_lea.vmem %s771_s1, %s494_s28 }
  0x18   : > { %v235_v3 = vld [vmem:[%s212_s27] sm:$0xff]  ;;  %v717_v25 = vsub.s32 0, %v714_v20  ;;  %v292_v26 = vsub.s32 4, %v714_v20  ;;  %s560_s23 = scalar_lea.vmem %s395_s15, 16  ;;  %s566_s27 = scalar_lea.vmem %s565_s26, 32 }
  0x19   : > { %v239_v4 = vcombine.high %v235_v3, %v235_v3  ;;  %v242_v5 = vsel %vm241_vm1, %v235_v3, -inf  ;;  %v236_v21 = vld [vmem:[%s223_s3] sm:$0x3]  ;;  %p561_p12 = scmp.ne.s32.totalorder %s395_s15, %s560_s23  ;;  %p568_p2 = scmp.lt.s32.totalorder %s566_s27, %s560_s23 }
  0x1a   : > { %v243_v6 = vrot.slane %v242_v5, 4  ;;  %v237_v23 = vunpack.c.0.s8 %v236_v21 }
  0x1b   : > { %v249_v7 = vsel %vm241_vm1, %v239_v4, -inf  ;;  %p562_p13 = pnand %p561_p12, %p683_p4  ;;  %p569_p3 = por %p568_p2, %p567_p1 }
  0x1c   : > { %v244_v8 = vmax.f32 %v242_v5, %v243_v6  ;;  %v250_v9 = vrot.slane %v249_v7, 4  ;;  %v289_v27 = vrot.slane %v237_v23, %v717_v25  ;;  %v293_v28 = vrot.slane %v237_v23, %v292_v26 }
  0x1d   : > { %v331_v5 = vunpack.c.0.s8 %v330_v63  ;;  %p563_p0 = pneg %p562_p13 }
  0x1e   : > { %v245_v10 = vrot.slane %v244_v8, 2  ;;  %v251_v11 = vmax.f32 %v249_v7, %v250_v9  ;;  %v297_v29 = vrot.slane %v289_v27, %v717_v25  ;;  %v301_v30 = vrot.slane %v293_v28, %v717_v25 }
  0x1f   : > { %p570_p5 = pnand %p569_p3, %p563_p0 }
  0x20   : > { %v246_v12 = vmax.f32 %v244_v8, %v245_v10  ;;  %v252_v13 = vrot.slane %v251_v11, 2  ;;  %vm302_vm2 = vcmp.eq.s32.totalorder %v714_v20, %v297_v29  ;;  %vm303_vm3 = vcmp.eq.s32.totalorder %v714_v20, %v301_v30 }
  0x21   : > { %v334_v10 = vsub.s32 %v331_v5, %v714_v20 }
  0x22   : > { %v247_v14 = vrot.slane %v246_v12, 1  ;;  %v253_v15 = vmax.f32 %v251_v11, %v252_v13  ;;  %v325_v13 = vld [vmem:[#allocation2] sm:$0x3] }
  0x24   : > { %v248_v16 = vmax.f32 %v246_v12, %v247_v14  ;;  %v254_v17 = vrot.slane %v253_v15, 1 }
  0x26   : > { %v255_v18 = vmax.f32 %v253_v15, %v254_v17 }
  0x28   : > { %v258_v19 = vcombine.low %v248_v16, %v255_v18  ;;  %v361_v16 = vsub.s32 1, %v714_v20 }
  0x2a   : > { %v260_v22 = vsub.f32 %v235_v3, %v258_v19 }
  0x2c   : > { %v261_v24 = vmul.f32 1.442695, %v260_v22  ;;  %v305_v31 = vcombine.high %v260_v22, %v260_v22  ;;  %v307_v33 = vsel %vm302_vm2, %v260_v22, 0.0 }
  0x2d   : > { %v309_v39 = vsel %vm241_vm1, %v307_v33, 0.0 }
  0x2e   : > { %554 = vpow2.f32 %v261_v24  ;;  %v308_v37 = vsel %vm303_vm3, %v305_v31, 0.0  ;;  %v310_v45 = vrot.slane %v309_v39, 4 }
  0x2f   : > { %v316_v42 = vsel %vm241_vm1, %v308_v37, 0.0 }
  0x30   : > { %v317_v48 = vrot.slane %v316_v42, 4  ;;  %v311_v51 = vadd.f32 %v310_v45, %v309_v39 }
  0x32   : > { %v318_v54 = vadd.f32 %v317_v48, %v316_v42  ;;  %v312_v56 = vrot.slane %v311_v51, 2 }
  0x34   : > { %v319_v57 = vrot.slane %v318_v54, 2  ;;  %v313_v58 = vadd.f32 %v312_v56, %v311_v51 }
  0x36   : > { %v320_v59 = vadd.f32 %v319_v57, %v318_v54  ;;  %v314_v60 = vrot.slane %v313_v58, 1 }
  0x38   : > { %v321_v61 = vrot.slane %v320_v59, 1  ;;  %v315_v0 = vadd.f32 %v314_v60, %v313_v58 }
  0x3a   : > { %v322_v4 = vadd.f32 %v321_v61, %v320_v59 }
  0x3b   : > { %v555_v32 = vpop.eup %554 }
  0x3c   : > { %v264_v34 = vcombine.high %v555_v32, %v555_v32  ;;  %v266_v35 = vsel %vm241_vm1, %v555_v32, 0.0 }
  0x3d   : > { %v267_v36 = vrot.slane %v266_v35, 4 }
  0x3e   : > { %v273_v38 = vsel %vm241_vm1, %v264_v34, 0.0 }
  0x3f   : > { %v268_v40 = vadd.f32 %v267_v36, %v266_v35  ;;  %v274_v41 = vrot.slane %v273_v38, 4 }
  0x41   : > { %v269_v43 = vrot.slane %v268_v40, 2  ;;  %v275_v44 = vadd.f32 %v274_v41, %v273_v38 }
  0x43   : > { %v270_v46 = vadd.f32 %v269_v43, %v268_v40  ;;  %v276_v47 = vrot.slane %v275_v44, 2 }
  0x45   : > { %v271_v49 = vrot.slane %v270_v46, 1  ;;  %v277_v50 = vadd.f32 %v276_v47, %v275_v44 }
  0x47   : > { %v272_v52 = vadd.f32 %v271_v49, %v270_v46  ;;  %v278_v53 = vrot.slane %v277_v50, 1 }
  0x49   : > { %v279_v55 = vadd.f32 %v278_v53, %v277_v50  ;;  %556 = vlog2.f32 %v272_v52 }
  0x4b   : > { %558 = vlog2.f32 %v279_v55 }
  0x56   : > { %v557_v2 = vpop.eup %556 }
  0x57   : > { %v281_v3 = vmul.f32 0.6931472, %v557_v2 }
  0x58   : > { %v559_v6 = vpop.eup %558 }
  0x59   : > { %v283_v7 = vmul.f32 0.6931472, %v559_v6  ;;  %v323_v8 = vsub.f32 %v281_v3, %v315_v0 }
  0x5b   : > { %v324_v9 = vsub.f32 %v283_v7, %v322_v4 }
  0x5d   : > { %v328_v11 = vcombine.low %v323_v8, %v324_v9 }
  0x5f   : > { %v335_v12 = vrot.slane %v328_v11, %v334_v10 }
  0x61   : > { %v342_v14 = vrot.slane %v335_v12, %v334_v10 }
  0x63   : > { %v344_v15 = vadd.f32 %v342_v14, %v325_v13 }
  0x65   : > { %349 = vst.msk [vmem:[#allocation2] sm:$0x3] %vm700_vm0, %v344_v15 }
  0x6c   : > { %v353_v17 = vld [vmem:[#allocation2] sm:$0x3] }
  0x6d   : > { %v358_v18 = vrot.slane %v353_v17, %v717_v25  ;;  %v362_v19 = vrot.slane %v353_v17, %v361_v16 }
  0x6f   : > { %v366_v21 = vsel %vm365_vm4, %v358_v18, 0.0  ;;  %v367_v22 = vsel %vm365_vm4, %v362_v19, 0.0 }
  0x70   : > { %v368_v23 = vadd.f32 %v367_v22, %v366_v21 }
  0x72   : > { %369 = vadd.xlane.f32.xlu0 %v368_v23 }
  0xfb   : > { %v370_v24 = vpop.xlane.xlu0 %369 }
  0xfc   : > { %v371_v26 = vrot.slane %v370_v24, 4 }
  0xfe   : > { %v372_v27 = vadd.f32 %v371_v26, %v370_v24 }
 0x100   : > { %v373_v28 = vrot.slane %v372_v27, 2 }
 0x102   : > { %v374_v1 = vadd.f32 %v373_v28, %v372_v27 }
 0x104   : > { %v375_v29 = vrot.slane %v374_v1, 1 }
 0x106   : > { %v376_v30 = vadd.f32 %v375_v29, %v374_v1 }
 0x108   : > { %499 = vpush %v376_v30 }
 0x139   : > { %s500_s16 = spop %499 }
 0x13a   : > { %379 = sst [smem:[%s202_s18]] %s500_s16 }
 0x13b   : > { %573 = shalt.err (!%p570_p5)
}
 0x13c   : > { %501 = dma.smem_to_vmem (%p683_p4), %s202_s18, 16, %s395_s15, %s381_s20  }
 0x13d PF: > { %p497_p6 = scmp.lt.s32.totalorder %s624_s14, 2 }
 0x13e   : > { %s406_s12 = sand.u32 (!%p497_p6), 1, %s604_s9  }
 0x13f   : > { %401 = sbr.rel (%p497_p6) target bundleno = 327 (0x147), region = 44  ;;  %s407_s28 = scalar_lea.sflag (!%p497_p6), [#allocation4], %s406_s12 }
 0x144   : > { %599 = dma.done.wait (%p690_p8), %s407_s28, 16  }
 0x145   : > { %601 = vsyncadd (%p690_p8), %s407_s28, 4294967280 }
 0x146   : > { %412 = sfence }
 0x147 PF: > { %s15_s14 = sadd.s32 1, %s624_s14   ;;  %s777_s9 = smov %s608_s10 }
 0x148   : > { %p12_p7 = scmp.ge.s32.totalorder %s15_s14, 4   ;;  %s778_s10 = smov %s612_s11 }
 0x149   : > { %s779_s11 = smov %s696_s22  ;;  %s780_s12 = smov %s620_s13 }
 0x14a   : > { %s781_s13 = smov %s783_s17  ;;  %14 = sbr.rel (!%p12_p7) target bundleno = 4 (0x4), region = 75 }
 0x14f   :  { %413 = vsyncpa [#allocation4], 1 }
 0x150   :  { %415 = vsyncpa [#allocation4 + $0x1], 1 }

</bundles_post_ra>
